<compile_context>
chip_gen: v7x
topology: tpu7x:2x2x1
jax: 0.10.0
libtpu: 0.0.40
codegen_flags: <defaults>
</compile_context>

<pallas_src>
import math
from functools import partial

import jax
import jax.numpy as jnp
from jax import lax
from jax.experimental import pallas as pl
from jax.experimental.pallas import tpu as pltpu


# ----------------------------------------------------------------------------
# Fused kernel: per-batch projection + masked attention (all heads) + W_o
# ----------------------------------------------------------------------------
def mha_fused_kernel(q_ref, k_ref, v_ref, vl_ref,       # (1,Lq,Dq) (1,Lk,Dk) (1,Lk,Dv) (1,Lq,1)
                     wq_ref, wk_ref, wv_ref, wo_ref,    # (Dq,H) (Dk,H) (Dv,H) (H,H)  [W^T, pre-cast]
                     out_ref,                           # (1, Lq, H)
                     concat_ref,                        # VMEM scratch (Lq, H) f32
                     *, num_heads, compute_dtype, approx_recip):
    Lq = q_ref.shape[1]
    Lk = k_ref.shape[1]
    H = wq_ref.shape[1]
    d = H // num_heads
    cdt = compute_dtype

    q = q_ref[0].astype(cdt)                            # (Lq, Dq)
    k = k_ref[0].astype(cdt)                            # (Lk, Dk)
    v = v_ref[0].astype(cdt)                            # (Lk, Dv)

    # Full-width projections (1/sqrt(d) already folded into W_q by the wrapper).
    qh = jnp.dot(q, wq_ref[...], preferred_element_type=jnp.float32)   # (Lq, H) f32
    kh = jnp.dot(k, wk_ref[...], preferred_element_type=jnp.float32)   # (Lk, H) f32
    vh = jnp.dot(v, wv_ref[...], preferred_element_type=jnp.float32)   # (Lk, H) f32

    # Per-query valid lengths -> key mask, shared by all heads.
    vl = vl_ref[0]                                                      # (Lq, 1) int32
    key_pos = lax.broadcasted_iota(jnp.int32, (Lq, Lk), dimension=1)
    mask = key_pos < vl                                                 # (Lq, Lk) bool

    # Heads are a static, small loop -> unrolled straight-line code.
    for h in range(num_heads):
        sl = slice(h * d, (h + 1) * d)
        qh_h = qh[:, sl].astype(cdt)                                    # (Lq, d)
        kh_h = kh[:, sl].astype(cdt)                                    # (Lk, d)
        vh_h = vh[:, sl].astype(cdt)                                    # (Lk, d)

        # scores = qh_h @ kh_h.T without materializing the transpose.
        scores = lax.dot_general(qh_h, kh_h, (((1,), (1,)), ((), ())),
                                 preferred_element_type=jnp.float32)    # (Lq, Lk)
        scores = jnp.where(mask, scores, jnp.float32(-1e6))

        # Numerically stable softmax (all f32); denominator applied after the
        # attn @ V matmul so only Lq*d elements get scaled.
        m = jnp.max(scores, axis=-1, keepdims=True)
        p = jnp.exp(scores - m)
        denom = jnp.sum(p, axis=-1, keepdims=True)

        o_h = jnp.dot(p.astype(cdt), vh_h,
                      preferred_element_type=jnp.float32)               # (Lq, d)
        concat_ref[:, sl] = o_h * pl.reciprocal(denom, approx=approx_recip)

    # Output projection on the lane-dense concatenated slab.
    out_ref[0] = jnp.dot(concat_ref[...].astype(cdt), wo_ref[...],
                         preferred_element_type=jnp.float32).astype(out_ref.dtype)


# ----------------------------------------------------------------------------
# Wrapper
# ----------------------------------------------------------------------------
@partial(jax.jit, static_argnames=("num_heads", "compute_dtype"))
def multihead_attention(queries, keys, values, valid_lens, params, *,
                        num_heads, compute_dtype=jnp.float32):
    """queries: (B, Lq, Dq), keys: (B, Lk, Dk), values: (B, Lk, Dv),
    valid_lens: None | (B,) | (B, Lq) int.  Returns (B, Lq, num_hiddens)."""
    B, Lq, Dq = queries.shape
    _, Lk, Dk = keys.shape
    _, _, Dv = values.shape

    wq, wk, wv, wo = params["wq"], params["wk"], params["wv"], params["wo"]  # torch Linear (out, in)
    H = wq.shape[0]
    d = H // num_heads

    # Pre-transpose weights to (in, out), fold 1/sqrt(d) into W_q, pre-cast
    # once to the MXU compute dtype.
    scale = jnp.float32(1.0 / math.sqrt(d))
    wq_t = (wq.T * scale).astype(compute_dtype)          # (Dq, H)
    wk_t = wk.T.astype(compute_dtype)                    # (Dk, H)
    wv_t = wv.T.astype(compute_dtype)                    # (Dv, H)
    wo_t = wo.T.astype(compute_dtype)                    # (H, H)

    # Normalize valid_lens to per-(batch, query) int32 of shape (B, Lq, 1).
    if valid_lens is None:
        vl = jnp.full((B, Lq), Lk, dtype=jnp.int32)
    elif valid_lens.ndim == 1:
        vl = jnp.broadcast_to(valid_lens.astype(jnp.int32)[:, None], (B, Lq))
    else:
        vl = valid_lens.astype(jnp.int32)
    vl = vl.reshape(B, Lq, 1)

    kernel = partial(mha_fused_kernel, num_heads=num_heads,
                     compute_dtype=compute_dtype,
                     # exact divide for the f32 path (tight checks); EUP-approx
                     # reciprocal when operands are already reduced precision.
                     approx_recip=(compute_dtype != jnp.float32))

    out = pl.pallas_call(
        kernel,
        out_shape=jax.ShapeDtypeStruct((B, Lq, H), jnp.float32),
        grid=(B,),
        in_specs=[
            pl.BlockSpec((1, Lq, Dq), lambda b: (b, 0, 0)),
            pl.BlockSpec((1, Lk, Dk), lambda b: (b, 0, 0)),
            pl.BlockSpec((1, Lk, Dv), lambda b: (b, 0, 0)),
            pl.BlockSpec((1, Lq, 1), lambda b: (b, 0, 0)),
            # Weights: constant block index -> fetched once, not per batch step.
            pl.BlockSpec((Dq, H), lambda b: (0, 0)),
            pl.BlockSpec((Dk, H), lambda b: (0, 0)),
            pl.BlockSpec((Dv, H), lambda b: (0, 0)),
            pl.BlockSpec((H, H), lambda b: (0, 0)),
        ],
        out_specs=pl.BlockSpec((1, Lq, H), lambda b: (b, 0, 0)),
        scratch_shapes=[pltpu.VMEM((Lq, H), jnp.float32)],
        compiler_params=pltpu.CompilerParams(
            dimension_semantics=("parallel",)),   # batch axis can shard across TCs
    )(queries, keys, values, vl, wq_t, wk_t, wv_t, wo_t)

    return out


# ----------------------------------------------------------------------------
# Pure-JAX reference (mirrors the torch module, eval mode)
# ----------------------------------------------------------------------------
def reference_mha(queries, keys, values, valid_lens, params, num_heads):
    B, Lq, _ = queries.shape
    _, Lk, _ = keys.shape
    wq, wk, wv, wo = params["wq"], params["wk"], params["wv"], params["wo"]
    H = wq.shape[0]
    d = H // num_heads

    def proj_split(x, w):
        y = x @ w.T                                        # (B, L, H)
        y = y.reshape(B, -1, num_heads, d).transpose(0, 2, 1, 3)
        return y.reshape(B * num_heads, -1, d)

    q = proj_split(queries, wq)
    k = proj_split(keys, wk)
    v = proj_split(values, wv)

    scores = jnp.einsum("bqd,bkd->bqk", q, k) / math.sqrt(d)
    if valid_lens is not None:
        if valid_lens.ndim == 1:
            vl = jnp.repeat(valid_lens, num_heads)[:, None]        # (B*H, 1)
        else:
            vl = jnp.repeat(valid_lens, num_heads, axis=0)          # (B*H, Lq)
        pos = jnp.arange(Lk)[None, None, :]
        scores = jnp.where(pos < vl[..., None], scores, -1e6)
    w = jax.nn.softmax(scores, axis=-1)
    out = jnp.einsum("bqk,bkd->bqd", w, v)
    out = out.reshape(B, num_heads, Lq, d).transpose(0, 2, 1, 3).reshape(B, Lq, H)
    return out @ wo.T


if __name__ == "__main__":
    # Small, deterministic config.
    B, Lq, Lk = 2, 8, 8
    query_size = key_size = value_size = 16
    num_hiddens, num_heads = 32, 4

    key = jax.random.PRNGKey(0)
    kq, kk, kv, kwq, kwk, kwv, kwo = jax.random.split(key, 7)

    queries = jax.random.normal(kq, (B, Lq, query_size), jnp.float32)
    keys_in = jax.random.normal(kk, (B, Lk, key_size), jnp.float32)
    values_in = jax.random.normal(kv, (B, Lk, value_size), jnp.float32)
    valid_lens = jnp.array([3, 6], dtype=jnp.int32)

    def linear_init(k, out_dim, in_dim):
        bound = 1.0 / math.sqrt(in_dim)
        return jax.random.uniform(k, (out_dim, in_dim), jnp.float32, -bound, bound)

    params = {
        "wq": linear_init(kwq, num_hiddens, query_size),
        "wk": linear_init(kwk, num_hiddens, key_size),
        "wv": linear_init(kwv, num_hiddens, value_size),
        "wo": linear_init(kwo, num_hiddens, num_hiddens),
    }

    ref = reference_mha(queries, keys_in, values_in, valid_lens, params, num_heads)

    # f32 MXU path (tight check).
    out = multihead_attention(queries, keys_in, values_in, valid_lens, params,
                              num_heads=num_heads, compute_dtype=jnp.float32)
    out = jax.block_until_ready(out)
    assert out.shape == (B, Lq, num_hiddens)
    assert jnp.allclose(out, ref, atol=5e-3, rtol=5e-3), "f32 path mismatch vs reference"

    # bf16 MXU operands, f32 accumulation / softmax (looser tolerance).
    out_bf16 = multihead_attention(queries, keys_in, values_in, valid_lens, params,
                                   num_heads=num_heads, compute_dtype=jnp.bfloat16)
    out_bf16 = jax.block_until_ready(out_bf16)
    assert jnp.allclose(out_bf16, ref, atol=8e-2, rtol=8e-2), "bf16 path mismatch vs reference"

    # 2-D (per-query) valid_lens path.
    vl2 = jnp.array([[1, 2, 3, 4, 5, 6, 7, 8],
                     [8, 7, 6, 5, 4, 3, 2, 1]], dtype=jnp.int32)
    out2 = multihead_attention(queries, keys_in, values_in, vl2, params,
                               num_heads=num_heads, compute_dtype=jnp.float32)
    out2 = jax.block_until_ready(out2)
    ref2 = reference_mha(queries, keys_in, values_in, vl2, params, num_heads)
    assert jnp.allclose(out2, ref2, atol=5e-3, rtol=5e-3), "2-D valid_lens mismatch vs reference"

    # valid_lens=None path (plain softmax over all keys).
    out3 = multihead_attention(queries, keys_in, values_in, None, params,
                               num_heads=num_heads, compute_dtype=jnp.float32)
    out3 = jax.block_until_ready(out3)
    ref3 = reference_mha(queries, keys_in, values_in, None, params, num_heads)
    assert jnp.allclose(out3, ref3, atol=5e-3, rtol=5e-3), "valid_lens=None mismatch vs reference"

    print("KERNEL_OK")
</pallas_src>

<mosaic_0001>
module attributes {stable_mosaic.version = 11 : i64} {
  func.func @mha_fused_kernel(%arg0: i32, %arg1: memref<1x8x16xf32, #tpu.memory_space<vmem>>, %arg2: memref<1x8x16xf32, #tpu.memory_space<vmem>>, %arg3: memref<1x8x16xf32, #tpu.memory_space<vmem>>, %arg4: memref<1x8x1xi32, #tpu.memory_space<vmem>>, %arg5: memref<16x32xf32, #tpu.memory_space<vmem>>, %arg6: memref<16x32xf32, #tpu.memory_space<vmem>>, %arg7: memref<16x32xf32, #tpu.memory_space<vmem>>, %arg8: memref<32x32xf32, #tpu.memory_space<vmem>>, %arg9: memref<1x8x32xf32, #tpu.memory_space<vmem>>, %arg10: memref<8x32xf32, #tpu.memory_space<vmem>>) attributes {dimension_semantics = [#tpu.dimension_semantics<parallel>], iteration_bounds = array<i64: 2>, scalar_prefetch = 0 : i64, scratch_operands = 1 : i64, tpu.core_type = #tpu.core_type<tc>, window_params = [{transform_indices = @transform_0, window_bounds = array<i64: 1, 8, 16>}, {transform_indices = @transform_1, window_bounds = array<i64: 1, 8, 16>}, {transform_indices = @transform_2, window_bounds = array<i64: 1, 8, 16>}, {transform_indices = @transform_3, window_bounds = array<i64: 1, 8, 1>}, {pipeline_mode = #tpu.pipeline_mode<synchronous>, transform_indices = @transform_4, window_bounds = array<i64: 16, 32>}, {pipeline_mode = #tpu.pipeline_mode<synchronous>, transform_indices = @transform_5, window_bounds = array<i64: 16, 32>}, {pipeline_mode = #tpu.pipeline_mode<synchronous>, transform_indices = @transform_6, window_bounds = array<i64: 16, 32>}, {pipeline_mode = #tpu.pipeline_mode<synchronous>, transform_indices = @transform_7, window_bounds = array<i64: 32, 32>}, {transform_indices = @transform_8, window_bounds = array<i64: 1, 8, 32>}]} {
    %c0 = arith.constant 0 : index
    %c0_0 = arith.constant 0 : index
    %c0_1 = arith.constant 0 : index
    %0 = vector.load %arg1[%c0, %c0_0, %c0_1] : memref<1x8x16xf32, #tpu.memory_space<vmem>>, vector<1x8x16xf32>
    %1 = vector.shape_cast %0 : vector<1x8x16xf32> to vector<8x16xf32>
    %c0_2 = arith.constant 0 : index
    %c0_3 = arith.constant 0 : index
    %c0_4 = arith.constant 0 : index
    %2 = vector.load %arg2[%c0_2, %c0_3, %c0_4] : memref<1x8x16xf32, #tpu.memory_space<vmem>>, vector<1x8x16xf32>
    %3 = vector.shape_cast %2 : vector<1x8x16xf32> to vector<8x16xf32>
    %c0_5 = arith.constant 0 : index
    %c0_6 = arith.constant 0 : index
    %c0_7 = arith.constant 0 : index
    %4 = vector.load %arg3[%c0_5, %c0_6, %c0_7] : memref<1x8x16xf32, #tpu.memory_space<vmem>>, vector<1x8x16xf32>
    %5 = vector.shape_cast %4 : vector<1x8x16xf32> to vector<8x16xf32>
    %c0_8 = arith.constant 0 : index
    %c0_9 = arith.constant 0 : index
    %6 = vector.load %arg5[%c0_8, %c0_9] : memref<16x32xf32, #tpu.memory_space<vmem>>, vector<16x32xf32>
    %cst = arith.constant dense<0.000000e+00> : vector<8x32xf32>
    %7 = tpu.matmul %1, %6, %cst {dimension_numbers = #tpu.dot_dimension_numbers<[1], [0], [0], [1], [0, 0, 1, 1], [], []>} : vector<8x16xf32>, vector<16x32xf32>, vector<8x32xf32> -> vector<8x32xf32>
    %c0_10 = arith.constant 0 : index
    %c0_11 = arith.constant 0 : index
    %8 = vector.load %arg6[%c0_10, %c0_11] : memref<16x32xf32, #tpu.memory_space<vmem>>, vector<16x32xf32>
    %cst_12 = arith.constant dense<0.000000e+00> : vector<8x32xf32>
    %9 = tpu.matmul %3, %8, %cst_12 {dimension_numbers = #tpu.dot_dimension_numbers<[1], [0], [0], [1], [0, 0, 1, 1], [], []>} : vector<8x16xf32>, vector<16x32xf32>, vector<8x32xf32> -> vector<8x32xf32>
    %c0_13 = arith.constant 0 : index
    %c0_14 = arith.constant 0 : index
    %10 = vector.load %arg7[%c0_13, %c0_14] : memref<16x32xf32, #tpu.memory_space<vmem>>, vector<16x32xf32>
    %cst_15 = arith.constant dense<0.000000e+00> : vector<8x32xf32>
    %11 = tpu.matmul %5, %10, %cst_15 {dimension_numbers = #tpu.dot_dimension_numbers<[1], [0], [0], [1], [0, 0, 1, 1], [], []>} : vector<8x16xf32>, vector<16x32xf32>, vector<8x32xf32> -> vector<8x32xf32>
    %c0_16 = arith.constant 0 : index
    %c0_17 = arith.constant 0 : index
    %c0_18 = arith.constant 0 : index
    %12 = vector.load %arg4[%c0_16, %c0_17, %c0_18] : memref<1x8x1xi32, #tpu.memory_space<vmem>>, vector<1x8x1xi32>
    %13 = vector.shape_cast %12 : vector<1x8x1xi32> to vector<8x1xi32>
    %14 = tpu.iota {dimensions = array<i32: 1>} : vector<8x8xi32>
    %15 = vector.broadcast %13 : vector<8x1xi32> to vector<8x8xi32>
    %16 = arith.cmpi slt, %14, %15 : vector<8x8xi32>
    %17 = vector.extract_strided_slice %7 {offsets = [0, 0], sizes = [8, 8], strides = [1, 1]} : vector<8x32xf32> to vector<8x8xf32>
    %18 = vector.extract_strided_slice %9 {offsets = [0, 0], sizes = [8, 8], strides = [1, 1]} : vector<8x32xf32> to vector<8x8xf32>
    %19 = vector.extract_strided_slice %11 {offsets = [0, 0], sizes = [8, 8], strides = [1, 1]} : vector<8x32xf32> to vector<8x8xf32>
    %cst_19 = arith.constant dense<0.000000e+00> : vector<8x8xf32>
    %20 = tpu.matmul %17, %18, %cst_19 {dimension_numbers = #tpu.dot_dimension_numbers<[1], [1], [0], [0], [0, 0, 1, 0], [], []>} : vector<8x8xf32>, vector<8x8xf32>, vector<8x8xf32> -> vector<8x8xf32>
    %cst_20 = arith.constant -1.000000e+06 : f32
    %21 = vector.broadcast %cst_20 : f32 to vector<8x8xf32>
    %22 = arith.select %16, %20, %21 : vector<8x8xi1>, vector<8x8xf32>
    %cst_21 = arith.constant dense<0xFF800000> : vector<8xf32>
    %23 = vector.multi_reduction <maximumf>, %22, %cst_21 [1] : vector<8x8xf32> to vector<8xf32>
    %24 = vector.shape_cast %23 : vector<8xf32> to vector<8x1xf32>
    %25 = vector.broadcast %24 : vector<8x1xf32> to vector<8x8xf32>
    %26 = arith.subf %22, %25 : vector<8x8xf32>
    %27 = math.exp %26 : vector<8x8xf32>
    %cst_22 = arith.constant dense<0.000000e+00> : vector<8xf32>
    %28 = vector.multi_reduction <add>, %27, %cst_22 [1] : vector<8x8xf32> to vector<8xf32>
    %29 = vector.shape_cast %28 : vector<8xf32> to vector<8x1xf32>
    %cst_23 = arith.constant dense<0.000000e+00> : vector<8x8xf32>
    %30 = tpu.matmul %27, %19, %cst_23 {dimension_numbers = #tpu.dot_dimension_numbers<[1], [0], [0], [1], [0, 0, 1, 1], [], []>} : vector<8x8xf32>, vector<8x8xf32>, vector<8x8xf32> -> vector<8x8xf32>
    %31 = tpu.reciprocal %29 : vector<8x1xf32> -> vector<8x1xf32>
    %32 = vector.broadcast %31 : vector<8x1xf32> to vector<8x8xf32>
    %33 = arith.mulf %30, %32 : vector<8x8xf32>
    %c0_24 = arith.constant 0 : index
    %c0_25 = arith.constant 0 : index
    %34 = vector.load %arg10[%c0_24, %c0_25] : memref<8x32xf32, #tpu.memory_space<vmem>>, vector<8x8xf32>
    tpu.vector_store %arg10[%c0_24, %c0_25], %33 {strides = array<i32>} : memref<8x32xf32, #tpu.memory_space<vmem>>, vector<8x8xf32>,
    %35 = vector.extract_strided_slice %7 {offsets = [0, 8], sizes = [8, 8], strides = [1, 1]} : vector<8x32xf32> to vector<8x8xf32>
    %36 = vector.extract_strided_slice %9 {offsets = [0, 8], sizes = [8, 8], strides = [1, 1]} : vector<8x32xf32> to vector<8x8xf32>
    %37 = vector.extract_strided_slice %11 {offsets = [0, 8], sizes = [8, 8], strides = [1, 1]} : vector<8x32xf32> to vector<8x8xf32>
    %cst_26 = arith.constant dense<0.000000e+00> : vector<8x8xf32>
    %38 = tpu.matmul %35, %36, %cst_26 {dimension_numbers = #tpu.dot_dimension_numbers<[1], [1], [0], [0], [0, 0, 1, 0], [], []>} : vector<8x8xf32>, vector<8x8xf32>, vector<8x8xf32> -> vector<8x8xf32>
    %cst_27 = arith.constant -1.000000e+06 : f32
    %39 = vector.broadcast %cst_27 : f32 to vector<8x8xf32>
    %40 = arith.select %16, %38, %39 : vector<8x8xi1>, vector<8x8xf32>
    %cst_28 = arith.constant dense<0xFF800000> : vector<8xf32>
    %41 = vector.multi_reduction <maximumf>, %40, %cst_28 [1] : vector<8x8xf32> to vector<8xf32>
    %42 = vector.shape_cast %41 : vector<8xf32> to vector<8x1xf32>
    %43 = vector.broadcast %42 : vector<8x1xf32> to vector<8x8xf32>
    %44 = arith.subf %40, %43 : vector<8x8xf32>
    %45 = math.exp %44 : vector<8x8xf32>
    %cst_29 = arith.constant dense<0.000000e+00> : vector<8xf32>
    %46 = vector.multi_reduction <add>, %45, %cst_29 [1] : vector<8x8xf32> to vector<8xf32>
    %47 = vector.shape_cast %46 : vector<8xf32> to vector<8x1xf32>
    %cst_30 = arith.constant dense<0.000000e+00> : vector<8x8xf32>
    %48 = tpu.matmul %45, %37, %cst_30 {dimension_numbers = #tpu.dot_dimension_numbers<[1], [0], [0], [1], [0, 0, 1, 1], [], []>} : vector<8x8xf32>, vector<8x8xf32>, vector<8x8xf32> -> vector<8x8xf32>
    %49 = tpu.reciprocal %47 : vector<8x1xf32> -> vector<8x1xf32>
    %50 = vector.broadcast %49 : vector<8x1xf32> to vector<8x8xf32>
    %51 = arith.mulf %48, %50 : vector<8x8xf32>
    %c0_31 = arith.constant 0 : index
    %c8 = arith.constant 8 : index
    %52 = vector.load %arg10[%c0_31, %c8] : memref<8x32xf32, #tpu.memory_space<vmem>>, vector<8x8xf32>
    tpu.vector_store %arg10[%c0_31, %c8], %51 {strides = array<i32>} : memref<8x32xf32, #tpu.memory_space<vmem>>, vector<8x8xf32>,
    %53 = vector.extract_strided_slice %7 {offsets = [0, 16], sizes = [8, 8], strides = [1, 1]} : vector<8x32xf32> to vector<8x8xf32>
    %54 = vector.extract_strided_slice %9 {offsets = [0, 16], sizes = [8, 8], strides = [1, 1]} : vector<8x32xf32> to vector<8x8xf32>
    %55 = vector.extract_strided_slice %11 {offsets = [0, 16], sizes = [8, 8], strides = [1, 1]} : vector<8x32xf32> to vector<8x8xf32>
    %cst_32 = arith.constant dense<0.000000e+00> : vector<8x8xf32>
    %56 = tpu.matmul %53, %54, %cst_32 {dimension_numbers = #tpu.dot_dimension_numbers<[1], [1], [0], [0], [0, 0, 1, 0], [], []>} : vector<8x8xf32>, vector<8x8xf32>, vector<8x8xf32> -> vector<8x8xf32>
    %cst_33 = arith.constant -1.000000e+06 : f32
    %57 = vector.broadcast %cst_33 : f32 to vector<8x8xf32>
    %58 = arith.select %16, %56, %57 : vector<8x8xi1>, vector<8x8xf32>
    %cst_34 = arith.constant dense<0xFF800000> : vector<8xf32>
    %59 = vector.multi_reduction <maximumf>, %58, %cst_34 [1] : vector<8x8xf32> to vector<8xf32>
    %60 = vector.shape_cast %59 : vector<8xf32> to vector<8x1xf32>
    %61 = vector.broadcast %60 : vector<8x1xf32> to vector<8x8xf32>
    %62 = arith.subf %58, %61 : vector<8x8xf32>
    %63 = math.exp %62 : vector<8x8xf32>
    %cst_35 = arith.constant dense<0.000000e+00> : vector<8xf32>
    %64 = vector.multi_reduction <add>, %63, %cst_35 [1] : vector<8x8xf32> to vector<8xf32>
    %65 = vector.shape_cast %64 : vector<8xf32> to vector<8x1xf32>
    %cst_36 = arith.constant dense<0.000000e+00> : vector<8x8xf32>
    %66 = tpu.matmul %63, %55, %cst_36 {dimension_numbers = #tpu.dot_dimension_numbers<[1], [0], [0], [1], [0, 0, 1, 1], [], []>} : vector<8x8xf32>, vector<8x8xf32>, vector<8x8xf32> -> vector<8x8xf32>
    %67 = tpu.reciprocal %65 : vector<8x1xf32> -> vector<8x1xf32>
    %68 = vector.broadcast %67 : vector<8x1xf32> to vector<8x8xf32>
    %69 = arith.mulf %66, %68 : vector<8x8xf32>
    %c0_37 = arith.constant 0 : index
    %c16 = arith.constant 16 : index
    %70 = vector.load %arg10[%c0_37, %c16] : memref<8x32xf32, #tpu.memory_space<vmem>>, vector<8x8xf32>
    tpu.vector_store %arg10[%c0_37, %c16], %69 {strides = array<i32>} : memref<8x32xf32, #tpu.memory_space<vmem>>, vector<8x8xf32>,
    %71 = vector.extract_strided_slice %7 {offsets = [0, 24], sizes = [8, 8], strides = [1, 1]} : vector<8x32xf32> to vector<8x8xf32>
    %72 = vector.extract_strided_slice %9 {offsets = [0, 24], sizes = [8, 8], strides = [1, 1]} : vector<8x32xf32> to vector<8x8xf32>
    %73 = vector.extract_strided_slice %11 {offsets = [0, 24], sizes = [8, 8], strides = [1, 1]} : vector<8x32xf32> to vector<8x8xf32>
    %cst_38 = arith.constant dense<0.000000e+00> : vector<8x8xf32>
    %74 = tpu.matmul %71, %72, %cst_38 {dimension_numbers = #tpu.dot_dimension_numbers<[1], [1], [0], [0], [0, 0, 1, 0], [], []>} : vector<8x8xf32>, vector<8x8xf32>, vector<8x8xf32> -> vector<8x8xf32>
    %cst_39 = arith.constant -1.000000e+06 : f32
    %75 = vector.broadcast %cst_39 : f32 to vector<8x8xf32>
    %76 = arith.select %16, %74, %75 : vector<8x8xi1>, vector<8x8xf32>
    %cst_40 = arith.constant dense<0xFF800000> : vector<8xf32>
    %77 = vector.multi_reduction <maximumf>, %76, %cst_40 [1] : vector<8x8xf32> to vector<8xf32>
    %78 = vector.shape_cast %77 : vector<8xf32> to vector<8x1xf32>
    %79 = vector.broadcast %78 : vector<8x1xf32> to vector<8x8xf32>
    %80 = arith.subf %76, %79 : vector<8x8xf32>
    %81 = math.exp %80 : vector<8x8xf32>
    %cst_41 = arith.constant dense<0.000000e+00> : vector<8xf32>
    %82 = vector.multi_reduction <add>, %81, %cst_41 [1] : vector<8x8xf32> to vector<8xf32>
    %83 = vector.shape_cast %82 : vector<8xf32> to vector<8x1xf32>
    %cst_42 = arith.constant dense<0.000000e+00> : vector<8x8xf32>
    %84 = tpu.matmul %81, %73, %cst_42 {dimension_numbers = #tpu.dot_dimension_numbers<[1], [0], [0], [1], [0, 0, 1, 1], [], []>} : vector<8x8xf32>, vector<8x8xf32>, vector<8x8xf32> -> vector<8x8xf32>
    %85 = tpu.reciprocal %83 : vector<8x1xf32> -> vector<8x1xf32>
    %86 = vector.broadcast %85 : vector<8x1xf32> to vector<8x8xf32>
    %87 = arith.mulf %84, %86 : vector<8x8xf32>
    %c0_43 = arith.constant 0 : index
    %c24 = arith.constant 24 : index
    %88 = vector.load %arg10[%c0_43, %c24] : memref<8x32xf32, #tpu.memory_space<vmem>>, vector<8x8xf32>
    tpu.vector_store %arg10[%c0_43, %c24], %87 {strides = array<i32>} : memref<8x32xf32, #tpu.memory_space<vmem>>, vector<8x8xf32>,
    %c0_44 = arith.constant 0 : index
    %c0_45 = arith.constant 0 : index
    %89 = vector.load %arg10[%c0_44, %c0_45] : memref<8x32xf32, #tpu.memory_space<vmem>>, vector<8x32xf32>
    %c0_46 = arith.constant 0 : index
    %c0_47 = arith.constant 0 : index
    %90 = vector.load %arg8[%c0_46, %c0_47] : memref<32x32xf32, #tpu.memory_space<vmem>>, vector<32x32xf32>
    %cst_48 = arith.constant dense<0.000000e+00> : vector<8x32xf32>
    %91 = tpu.matmul %89, %90, %cst_48 {dimension_numbers = #tpu.dot_dimension_numbers<[1], [0], [0], [1], [0, 0, 1, 1], [], []>} : vector<8x32xf32>, vector<32x32xf32>, vector<8x32xf32> -> vector<8x32xf32>
    %c0_49 = arith.constant 0 : index
    %c0_50 = arith.constant 0 : index
    %c0_51 = arith.constant 0 : index
    %92 = vector.load %arg9[%c0_49, %c0_50, %c0_51] : memref<1x8x32xf32, #tpu.memory_space<vmem>>, vector<1x8x32xf32>
    %93 = vector.shape_cast %92 : vector<1x8x32xf32> to vector<8x32xf32>
    %94 = vector.shape_cast %91 : vector<8x32xf32> to vector<1x8x32xf32>
    tpu.vector_store %arg9[%c0_49, %c0_50, %c0_51], %94 {strides = array<i32>} : memref<1x8x32xf32, #tpu.memory_space<vmem>>, vector<1x8x32xf32>,
    return
  }
  func.func @transform_0(%arg0: i32) -> (i32, i32, i32) {
    %c0_i32 = arith.constant 0 : i32
    %c0_i32_0 = arith.constant 0 : i32
    %c0_i32_1 = arith.constant 0 : i32
    return %arg0, %c0_i32, %c0_i32_0 : i32, i32, i32
  }
  func.func @transform_1(%arg0: i32) -> (i32, i32, i32) {
    %c0_i32 = arith.constant 0 : i32
    %c0_i32_0 = arith.constant 0 : i32
    %c0_i32_1 = arith.constant 0 : i32
    return %arg0, %c0_i32, %c0_i32_0 : i32, i32, i32
  }
  func.func @transform_2(%arg0: i32) -> (i32, i32, i32) {
    %c0_i32 = arith.constant 0 : i32
    %c0_i32_0 = arith.constant 0 : i32
    %c0_i32_1 = arith.constant 0 : i32
    return %arg0, %c0_i32, %c0_i32_0 : i32, i32, i32
  }
  func.func @transform_3(%arg0: i32) -> (i32, i32, i32) {
    %c0_i32 = arith.constant 0 : i32
    %c0_i32_0 = arith.constant 0 : i32
    %c0_i32_1 = arith.constant 0 : i32
    return %arg0, %c0_i32, %c0_i32_0 : i32, i32, i32
  }
  func.func @transform_4(%arg0: i32) -> (i32, i32) {
    %c0_i32 = arith.constant 0 : i32
    %c0_i32_0 = arith.constant 0 : i32
    %c0_i32_1 = arith.constant 0 : i32
    return %c0_i32, %c0_i32_0 : i32, i32
  }
  func.func @transform_5(%arg0: i32) -> (i32, i32) {
    %c0_i32 = arith.constant 0 : i32
    %c0_i32_0 = arith.constant 0 : i32
    %c0_i32_1 = arith.constant 0 : i32
    return %c0_i32, %c0_i32_0 : i32, i32
  }
  func.func @transform_6(%arg0: i32) -> (i32, i32) {
    %c0_i32 = arith.constant 0 : i32
    %c0_i32_0 = arith.constant 0 : i32
    %c0_i32_1 = arith.constant 0 : i32
    return %c0_i32, %c0_i32_0 : i32, i32
  }
  func.func @transform_7(%arg0: i32) -> (i32, i32) {
    %c0_i32 = arith.constant 0 : i32
    %c0_i32_0 = arith.constant 0 : i32
    %c0_i32_1 = arith.constant 0 : i32
    return %c0_i32, %c0_i32_0 : i32, i32
  }
  func.func @transform_8(%arg0: i32) -> (i32, i32, i32) {
    %c0_i32 = arith.constant 0 : i32
    %c0_i32_0 = arith.constant 0 : i32
    %c0_i32_1 = arith.constant 0 : i32
    return %arg0, %c0_i32, %c0_i32_0 : i32, i32, i32
  }
}

</mosaic_0001>

<bundles_post_ra>
// kernel: multihead_attention.1
= control target key start
LH: loop header
LB: loop body
LE: loop exit
PB: predicated region body
PF: predicated region fallthrough
CT: control target
= control target key end

     0   :  { %13 = vsyncpa [#allocation4], 0  ;;  %s2002_s0 = inlined_call_operand.vmem [shape: f32[2,8,16], index: 0, kind: input, shape index: {}]   ;;  %s2003_s1 = inlined_call_operand.vmem [shape: f32[2,8,16], index: 1, kind: input, shape index: {}]   ;;  %s2004_s2 = inlined_call_operand.vmem [shape: f32[2,8,16], index: 2, kind: input, shape index: {}]   ;;  %s2005_s3 = inlined_call_operand.vmem [shape: s32[2,8,1], index: 3, kind: input, shape index: {}]   ;;  %s2006_s4 = inlined_call_operand.vmem [shape: f32[16,32], index: 4, kind: input, shape index: {}]   ;;  %s2007_s5 = inlined_call_operand.vmem [shape: f32[16,32], index: 5, kind: input, shape index: {}]   ;;  %s2008_s6 = inlined_call_operand.vmem [shape: f32[16,32], index: 6, kind: input, shape index: {}]   ;;  %s2009_s7 = inlined_call_operand.vmem [shape: f32[32,32], index: 7, kind: input, shape index: {}]   ;;  %s2010_s8 = inlined_call_operand.hbm [shape: f32[2,8,32], index: 8, kind: output, shape index: {}]  }
   0x1   :  { %15 = vsyncpa [#allocation4 + $0x1], 0  ;;  %s1789_s27 = smov 0   ;;  %s1791_s28 = smov 0  }
   0x2   :  { %s1793_s29 = smov 0   ;;  %s1795_s30 = smov 0  }
   0x3 LB: > { %s1810_s9 = sadd.s32 4294967295, %s1731_s30   ;;  %s1457_s10 = sadd.s32 4294967294, %s1731_s30   ;;  %s1731_s30 = sphi %s1795_s30, %s2016_s30   ;;  %s1727_s29 = sphi %s1793_s29, %s2015_s29   ;;  %s1723_s28 = sphi %s1791_s28, %s2014_s28   ;;  %s1719_s27 = sphi %s1789_s27, %s2013_s27  }
   0x4   : > { %s1814_s11 = sadd.s32 1, %s1731_s30   ;;  %s216_s12 = sadd.s32 1, %s1727_s29 }
   0x5   : > { %s213_s13 = ssub.s32 %s1731_s30, %s1814_s11  ;;  %p226_p0 = scmp.ne.s32.totalorder %s1727_s29, %s1723_s28 }
   0x6   : > { %p214_p1 = scmp.eq.s32.totalorder %s213_s13, 0  ;;  %p227_p2 = scmp.eq.s32.totalorder %s1810_s9, 1 }
   0x7   : > { %p232_p3 = scmp.ne.s32.totalorder %s1723_s28, %s1719_s27  ;;  %p233_p4 = scmp.eq.s32.totalorder %s1457_s10, 1 }
   0x8   : > { %s1825_s14 = scalar_select %p214_p1, %s1727_s29, %s216_s12  }
   0x9   : > { %p1827_p5 = por %p227_p2, %p226_p0  ;;  %p1831_p6 = por %p233_p4, %p232_p3 }
   0xa   : > { %p1460_p7 = scmp.ge.s32.totalorder %s1731_s30, 1  ;;  %p291_p8 = scmp.lt.s32.totalorder %s1731_s30, 3 }
   0xc   : > { %p292_p9 = pnand %p1460_p7, %p291_p8 }
   0xd   : > { %v431_v0 = vld [vmem:[%s2007_s5] sm:$0xff] (!%p292_p9)  ;;  %v432_v1 = vld [vmem:[%s2007_s5 + $0x8] sm:$0xff] (!%p292_p9)  ;;  %v1733_v3 = vmov (!%p292_p9), 0.0|0.0   ;;  %p336_p10 = scmp.lt.s32.totalorder (!%p292_p9), %s1810_s9, 1  ;;  %vm1734_vm0 = vmmov (!%p292_p9), 0   ;;  %v1735_v6 = vmov (!%p292_p9), 0.0   ;;  %v582_v28 = vlaneseq (!%p292_p9) }
   0xe   : > { %295 = sbr.rel (%p292_p9) target bundleno = 1300 (0x514), region = 52  ;;  %v355_v2 = vld [vmem:[%s2006_s4] sm:$0xff] (!%p292_p9)  ;;  %1591 = vmatprep.subr.bf16.mxu1 (!%p292_p9), %v1733_v3  ;;  %v1592_v4 = vpack.c.bf16 (!%p292_p9), %v432_v1, %v431_v0  ;;  %1588 = vmatprep.subr.bf16.mxu0 (!%p292_p9), %v1733_v3  ;;  %v356_v5 = vld [vmem:[%s2006_s4 + $0x8] sm:$0xff] (!%p292_p9)  ;;  %vm357_vm1 = vcmask (!%p292_p9), 130048   ;;  %v1736_v14 = vmov (!%p292_p9), 0   ;;  %vm588_vm2 = vcmask (!%p292_p9), 64512  }
   0xf   : > { %1527 = vmatprep.mubr.msk.f32.mxu1 (!%p292_p9), %vm1734_vm0, %v1735_v6  ;;  %v1589_v7 = vpack.c.bf16 (!%p292_p9), %v356_v5, %v355_v2  ;;  %1520 = vmatprep.mubr.msk.f32.mxu0 (!%p292_p9), %vm1734_vm0, %v1735_v6  ;;  %v506_v8 = vld [vmem:[%s2008_s6] sm:$0xff] (!%p292_p9)  ;;  %v507_v9 = vld [vmem:[%s2008_s6 + $0x8] sm:$0xff] (!%p292_p9)  ;;  %s1737_s10 = smov (!%p292_p9), 112   ;;  %s1738_s12 = smov (!%p292_p9), 120   ;;  %v583_v29 = vand.u32 (!%p292_p9), 127, %v582_v28  ;;  %vm922_vm4 = vcmask (!%p292_p9), 130112  }
  0x10   : > { %1593 = vmatpush3.bf16.msra.mxu1 (!%p292_p9), %v1592_v4  ;;  %v1595_v10 = vpack.c.bf16 (!%p292_p9), %v507_v9, %v506_v8  ;;  %1652 = vset.pattern.permute.xlu0 (!%p292_p9), %v1736_v14  ;;  %s1742_s18 = smov (!%p292_p9), 24   ;;  %vm1094_vm5 = vcmask (!%p292_p9), 195712   ;;  %vm1266_vm6 = vcmask (!%p292_p9), 261312   ;;  %vm1273_vm7 = vcmask (!%p292_p9), 261120  }
  0x11   : > { %1590 = vmatpush3.bf16.msra.mxu0 (!%p292_p9), %v1589_v7  ;;  %1537 = vmatprep.subr.mxu1 (!%p292_p9), %v1735_v6 }
  0x12   : > { %1594 = vmatprep.subr.bf16.mxu0 (!%p292_p9), %v1733_v3 }
  0x15   : > { %s337_s13 = scalar_select %p336_p10, %s1810_s9, 1 }
  0x17   : > { %s1864_s17 = sshll.u32 %s337_s13, 3  ;;  %s1741_s13 = smov 16  }
  0x18   : > { %s343_s20 = scalar_lea.vmem %s2003_s1, %s1864_s17  ;;  %s339_s23 = scalar_lea.vmem %s2002_s0, %s1864_s17 }
  0x19   : > { %v353_v11 = vld [vmem:[%s343_s20] sm:$0xff]  ;;  %s347_s26 = scalar_lea.vmem %s2004_s2, %s1864_s17  ;;  %s351_s19 = scalar_lea.vmem %s2005_s3, %s1864_s17 }
  0x1a   : > { %v352_v12 = vld [vmem:[%s339_s23] sm:$0xff]  ;;  %1528 = vmatmul.mubr.msk.f32.vlgmr.msra.gmra.mrb[0].mxu1 %vm357_vm1, %v353_v11  ;;  %s1739_s20 = smov 104   ;;  %s1483_s17 = sshll.u32 %s1810_s9, 7 }
  0x1b   : > { %1521 = vmatmul.mubr.msk.f32.vlgmr.msra.gmra.mrb[0].mxu0 %vm357_vm1, %v352_v12  ;;  %v354_v13 = vld [vmem:[%s347_s26] sm:$0xff]  ;;  %1539 = vmatprep.mubr.msk.f32.mxu1 %vm1734_vm0, %v1735_v6  ;;  %s1960_s25 = scalar_lea.hbm %s2010_s8, %s1483_s17  ;;  %s1743_s9 = smov [#allocation3]  }
  0x1c   : > { %1596 = vmatpush3.bf16.msra.mxu0 %v1595_v10  ;;  %1534 = vmatprep.mubr.msk.f32.mxu0 %vm1734_vm0, %v1735_v6  ;;  %v581_v21 = vld [vmem:[%s351_s19] sm:$0xff]  ;;  %s333_s19 = sand.u32 1, %s1723_s28  }
  0x1d   : > { %1542 = vmatprep.subr.mxu0 %v1735_v6  ;;  %s1349_s26 = scalar_lea.sflag [#allocation4], %s333_s19 }
  0x1f   : > { %1535 = vmatmul.mubr.msk.f32.vlgmr.msra.gmra.mrb[2].mxu0 %vm357_vm1, %v354_v13 }
  0x20   : > { %1544 = vmatprep.mubr.msk.f32.mxu0 %vm1734_vm0, %v1735_v6 }
  0xed   : > { %v502_v15 = vpop.f32.mrb[0].mxu1 }
  0xee   : > { %v427_v16 = vpop.f32.mrb[0].mxu0  ;;  %926 = vrot.lane.b32.xlu1 %v502_v15, %s1737_s10  ;;  %753 = vrot.lane.b32.xlu0 %v502_v15, %s1738_s12  ;;  %v1529_v17 = vpop.f32.mrb[1].mxu1 }
  0xef   : > { %v1522_v18 = vpop.f32.mrb[1].mxu0  ;;  %1538 = vmatpush3.xpose.msk.msra.mxu1 %vm588_vm2, %v502_v15 }
  0xf0   : > { %1547 = vmatprep.subr.mxu1 %v1735_v6  ;;  %v1271_v18 = vld [vmem:[%s2009_s7 + $0x10] sm:$0xff] }
  0xf2   : > { %v577_v19 = vpop.f32.mrb[2].mxu0  ;;  %1540 = vmatmul.mubr.msk.f32.vlgmr.msra.gmra.mrb[2].mxu1 %vm588_vm2, %v427_v16  ;;  %924 = vrot.lane.b32.xlu1 %v427_v16, %s1737_s10 }
  0xf3   : > { %v1536_v20 = vpop.f32.mrb[3].mxu0  ;;  %751 = vrot.lane.b32.xlu0 %v427_v16, %s1738_s12  ;;  %1549 = vmatprep.mubr.msk.f32.mxu1 %vm1734_vm0, %v1735_v6 }
  0xf4   : > { %1543 = vmatpush3.msra.mxu0 %v577_v19 }
  0xf5   : > { %1552 = vmatprep.subr.mxu0 %v1735_v6 }
  0xf6   : > { %1096 = vrot.lane.b32.xlu1 %v427_v16, %s1739_s20  ;;  %v1270_v16 = vld [vmem:[%s2009_s7 + $0x8] sm:$0xff] }
  0xf7   : > { %1098 = vrot.lane.b32.xlu0 %v502_v15, %s1739_s20 }
  0xfa   : > { %840 = vrot.lane.b32.xlu1 %v577_v19, %s1738_s12  ;;  %s1740_s12 = smov 8  }
  0xfb   : > { %585 = vperm.xlu0 %1652, %v581_v21  }
 0x160   : > { %v754_v22 = vpop.permute.xlu0 %753  ;;  %v927_v23 = vpop.permute.xlu1 %926 }
 0x161   : > { %1548 = vmatpush3.xpose.msk.msra.mxu1 %vm588_vm2, %v754_v22 }
 0x162   : > { %1557 = vmatprep.subr.mxu1 %v1735_v6 }
 0x164   : > { %v925_v25 = vpop.permute.xlu1 %924 }
 0x165   : > { %v752_v24 = vpop.permute.xlu0 %751 }
 0x166   : > { %1550 = vmatmul.mubr.msk.f32.vlgmr.msra.gmra.mrb[4].mxu1 %vm588_vm2, %v752_v24 }
 0x167   : > { %1558 = vmatpush3.xpose.msk.msra.mxu1 %vm588_vm2, %v927_v23  ;;  %1559 = vmatprep.mubr.msk.f32.mxu1 %vm1734_vm0, %v1735_v6 }
 0x168   : > { %1567 = vmatprep.subr.mxu1 %v1735_v6  ;;  %v1097_v27 = vpop.permute.xlu1 %1096 }
 0x169   : > { %v1099_v26 = vpop.permute.xlu0 %1098 }
 0x16a   : > { %1560 = vmatmul.mubr.msk.f32.vlgmr.msra.gmra.mrb[6].mxu1 %vm588_vm2, %v925_v25 }
 0x16b   : > { %1568 = vmatpush3.xpose.msk.msra.mxu1 %vm588_vm2, %v1099_v26  ;;  %1569 = vmatprep.mubr.msk.f32.mxu1 %vm1734_vm0, %v1735_v6 }
 0x16c   : > { %1597 = vmatprep.subr.bf16.mxu1 %v1733_v3  ;;  %v841_v47 = vpop.permute.xlu1 %840 }
 0x16e   : > { %1570 = vmatmul.mubr.msk.f32.vlgmr.msra.gmra.mrb[8].mxu1 %vm588_vm2, %v1097_v27 }
 0x16f   : > { %1585 = vmatprep.mubr.msk.f32.mxu1 %vm1734_vm0, %v1735_v6 }
 0x17a   : > { %v586_v30 = vpop.permute.xlu0 %585 }
 0x17b   : > { %vm587_vm3 = vcmp.lt.s32.totalorder %v583_v29, %v586_v30 }
 0x1c5   : > { %v661_v31 = vpop.f32.mrb[2].mxu1 }
 0x1c6   : > { %v665_v32 = vsel %vm587_vm3, %v661_v31, -1000000.0  ;;  %v1541_v33 = vpop.f32.mrb[3].mxu1 }
 0x1c7   : > { %v666_v34 = vsel %vm588_vm2, %v665_v32, -inf }
 0x1c8   : > { %667 = vmax.xlane.f32.xlu1 %v666_v34 }
 0x239   : > { %v825_v35 = vpop.f32.mrb[4].mxu1 }
 0x23a   : > { %v829_v36 = vsel %vm587_vm3, %v825_v35, -1000000.0  ;;  %v1551_v37 = vpop.f32.mrb[5].mxu1 }
 0x23b   : > { %v830_v38 = vsel %vm588_vm2, %v829_v36, -inf }
 0x23c   : > { %831 = vmax.xlane.f32.xlu0 %v830_v38 }
 0x23d   : > { %v998_v39 = vpop.f32.mrb[6].mxu1 }
 0x23e   : > { %v1002_v40 = vsel %vm587_vm3, %v998_v39, -1000000.0  ;;  %v1561_v41 = vpop.f32.mrb[7].mxu1 }
 0x23f   : > { %v1003_v42 = vsel %vm588_vm2, %v1002_v40, -inf }
 0x240   : > { %1004 = vmax.xlane.f32.xlu1 %v1003_v42 }
 0x241   : > { %v1170_v43 = vpop.f32.mrb[8].mxu1 }
 0x242   : > { %v1174_v44 = vsel %vm587_vm3, %v1170_v43, -1000000.0  ;;  %v1571_v45 = vpop.f32.mrb[9].mxu1 }
 0x243   : > { %v1175_v46 = vsel %vm588_vm2, %v1174_v44, -inf }
 0x244   : > { %1176 = vmax.xlane.f32.xlu0 %v1175_v46 }
 0x251   : > { %1184 = vrot.lane.b32.xlu1 %v577_v19, %s1739_s20  ;;  %s1461_s20 = sshll.u32 %s333_s19, 3 }
 0x252   : > { %s335_s21 = scalar_lea.vmem [#allocation3], %s1461_s20 }
 0x253   : > { %s1362_s22 = sshll.u32 %s335_s21, 4  ;;  %s1962_s22 = int_to_ptr.vmem [resolvable:$true] %s1362_s22 }
 0x255   : > { %v668_v48 = vpop.xlane.xlu1 %667 }
 0x256   : > { %v669_v49 = vsub.f32 %v665_v32, %v668_v48 }
 0x258   : > { %v670_v50 = vmul.f32 1.442695, %v669_v49 }
 0x25a   : > { %1653 = vpow2.f32 %v670_v50  ;;  %1012 = vrot.lane.b32.xlu0 %v577_v19, %s1737_s10  ;;  %v1272_v19 = vld [vmem:[%s2009_s7 + $0x18] sm:$0xff]  ;;  %s1669_s10 = scalar_lea.vmem %s1962_s22, 128 }
 0x25b   : > { %v1601_v22 = vpack.c.bf16 %v1272_v19, %v1271_v18  ;;  %p1670_p11 = scmp.ne.s32.totalorder %s1962_s22, %s1669_s10 }
 0x25d   : > { %p1671_p12 = pnand %p1670_p11, %p1827_p5 }
 0x25f   : > { %p1672_p13 = pneg %p1671_p12 }
 0x264   : > { %v1654_v51 = vpop.eup %1653 }
 0x265   : > { %1545 = vmatmul.mubr.msk.f32.vlgmr.msra.gmra.mrb[4].mxu0 %vm588_vm2, %v1654_v51  ;;  %v672_v2 = vsel %vm588_vm2, %v1654_v51, 0.0 }
 0x266   : > { %1553 = vmatpush3.msra.mxu0 %v841_v47  ;;  %1554 = vmatprep.mubr.msk.f32.mxu0 %vm1734_vm0, %v1735_v6 }
 0x267   : > { %1562 = vmatprep.subr.mxu0 %v1735_v6 }
 0x2c9   : > { %v832_v52 = vpop.xlane.xlu0 %831 }
 0x2ca   : > { %v833_v53 = vsub.f32 %v829_v36, %v832_v52 }
 0x2cc   : > { %v834_v54 = vmul.f32 1.442695, %v833_v53 }
 0x2cd   : > { %v1005_v55 = vpop.xlane.xlu1 %1004 }
 0x2ce   : > { %1655 = vpow2.f32 %v834_v54  ;;  %v1006_v56 = vsub.f32 %v1002_v40, %v1005_v55 }
 0x2d0   : > { %v1007_v57 = vmul.f32 1.442695, %v1006_v56 }
 0x2d1   : > { %v1177_v58 = vpop.xlane.xlu0 %1176  ;;  %v1185_v1 = vpop.permute.xlu1 %1184 }
 0x2d2   : > { %1657 = vpow2.f32 %v1007_v57  ;;  %v1178_v59 = vsub.f32 %v1174_v44, %v1177_v58 }
 0x2d4   : > { %v1179_v60 = vmul.f32 1.442695, %v1178_v59 }
 0x2d5   : > { %v1013_v62 = vpop.permute.xlu0 %1012 }
 0x2d6   : > { %1659 = vpow2.f32 %v1179_v60 }
 0x2d8   : > { %v1656_v61 = vpop.eup %1655 }
 0x2d9   : > { %1555 = vmatmul.mubr.msk.f32.vlgmr.msra.gmra.mrb[6].mxu0 %vm588_vm2, %v1656_v61  ;;  %v836_v63 = vsel %vm588_vm2, %v1656_v61, 0.0 }
 0x2da   : > { %1563 = vmatpush3.msra.mxu0 %v1013_v62  ;;  %837 = vadd.xlane.f32.xlu1 %v836_v63 }
 0x2db   : > { %1564 = vmatprep.mubr.msk.f32.mxu0 %vm1734_vm0, %v1735_v6  ;;  %1572 = vmatprep.subr.mxu0 %v1735_v6 }
 0x2dc   : > { %v1658_v0 = vpop.eup %1657 }
 0x2dd   : > { %1565 = vmatmul.mubr.msk.f32.vlgmr.msra.gmra.mrb[8].mxu0 %vm588_vm2, %v1658_v0  ;;  %v1009_v4 = vsel %vm588_vm2, %v1658_v0, 0.0 }
 0x2de   : > { %1573 = vmatpush3.msra.mxu0 %v1185_v1  ;;  %673 = vadd.xlane.f32.xlu1 %v672_v2 }
 0x2df   : > { %1010 = vadd.xlane.f32.xlu0 %v1009_v4  ;;  %1574 = vmatprep.mubr.msk.f32.mxu0 %vm1734_vm0, %v1735_v6  ;;  %v1269_v6 = vld [vmem:[%s2009_s7] sm:$0xff] }
 0x2e0   : > { %v1660_v5 = vpop.eup %1659  ;;  %v1598_v17 = vpack.c.bf16 %v1270_v16, %v1269_v6 }
 0x2e1   : > { %1575 = vmatmul.mubr.msk.f32.vlgmr.msra.gmra.mrb[10].mxu0 %vm588_vm2, %v1660_v5  ;;  %v1181_v7 = vsel %vm588_vm2, %v1660_v5, 0.0 }
 0x2e2   : > { %1599 = vmatpush3.bf16.msra.mxu1 %v1598_v17 }
 0x2e3   : > { %1182 = vadd.xlane.f32.xlu0 %v1181_v7  ;;  %1600 = vmatprep.subr.bf16.mxu1 %v1733_v3 }
 0x2e6   : > { %1602 = vmatpush3.bf16.msra.mxu1 %v1601_v22 }
 0x338   : > { %v744_v8 = vpop.f32.mrb[4].mxu0 }
 0x339   : > { %v1546_v9 = vpop.f32.mrb[5].mxu0 }
 0x367   : > { %v838_v10 = vpop.xlane.xlu1 %837 }
 0x36b   : > { %v674_v11 = vpop.xlane.xlu1 %673 }
 0x36c   : > { %1661 = vrcp.f32 %v674_v11  ;;  %v1011_v14 = vpop.xlane.xlu0 %1010 }
 0x36d   : > { %1663 = vrcp.f32 %v838_v10 }
 0x36e   : > { %1665 = vrcp.f32 %v1011_v14 }
 0x370   : > { %v1183_v15 = vpop.xlane.xlu0 %1182 }
 0x371   : > { %1667 = vrcp.f32 %v1183_v15 }
 0x376   : > { %v1662_v12 = vpop.eup %1661 }
 0x377   : > { %v749_v13 = vmul.f32 %v1662_v12, %v744_v8  ;;  %v1664_v20 = vpop.eup %1663 }
 0x378   : > { %v1666_v25 = vpop.eup %1665 }
 0x379   : > { %750 = vst.msk [vmem:[#allocation2] sm:$0xff] %vm588_vm2, %v749_v13 }
 0x37b   : > { %v1668_v29 = vpop.eup %1667 }
 0x3ac   : > { %v912_v21 = vpop.f32.mrb[6].mxu0 }
 0x3ad   : > { %v917_v23 = vmul.f32 %v1664_v20, %v912_v21  ;;  %v1556_v24 = vpop.f32.mrb[7].mxu0 }
 0x3af   : > { %919 = vrot.lane.b32.xlu0 %v917_v23, %s1740_s12  ;;  %s1673_s12 = sshll.u32 %s1743_s9, 4  ;;  %s1674_s12 = int_to_ptr.vmem [resolvable:$false] %s1673_s12 }
 0x3b0   : > { %v1084_v26 = vpop.f32.mrb[8].mxu0  ;;  %p1676_p0 = scmp.lt.s32.totalorder %s1962_s22, %s1674_s12 }
 0x3b1   : > { %v1089_v27 = vmul.f32 %v1666_v25, %v1084_v26  ;;  %v1566_v28 = vpop.f32.mrb[9].mxu0 }
 0x3b3   : > { %1091 = vrot.lane.b32.xlu1 %v1089_v27, %s1741_s13  ;;  %s1675_s13 = scalar_lea.vmem %s1674_s12, 256 }
 0x3b4   : > { %v1256_v30 = vpop.f32.mrb[10].mxu0  ;;  %p1677_p1 = scmp.lt.s32.totalorder %s1675_s13, %s1669_s10 }
 0x3b5   : > { %v1261_v31 = vmul.f32 %v1668_v29, %v1256_v30  ;;  %v1576_v32 = vpop.f32.mrb[11].mxu0 }
 0x3b6   : > { %p1678_p2 = por %p1677_p1, %p1676_p0 }
 0x3b7   : > { %1263 = vrot.lane.b32.xlu1 %v1261_v31, %s1742_s18 }
 0x3b8   : > { %p1679_p3 = pnand %p1678_p2, %p1672_p13 }
 0x421   : > { %v920_v33 = vpop.permute.xlu0 %919 }
 0x422   : > { %923 = vst.msk [vmem:[#allocation2] sm:$0xff] %vm922_vm4, %v920_v33 }
 0x425   : > { %v1092_v3 = vpop.permute.xlu1 %1091 }
 0x426   : > { %1095 = vst.msk [vmem:[#allocation2] sm:$0xff] %vm1094_vm5, %v1092_v3 }
 0x429   : > { %v1264_v34 = vpop.permute.xlu1 %1263 }
 0x42a   : > { %1267 = vst.msk [vmem:[#allocation2] sm:$0xff] %vm1266_vm6, %v1264_v34 }
 0x431   : > { %v1268_v35 = vld [vmem:[#allocation2] sm:$0xff] }
 0x432   : > { %1586 = vmatmul.mubr.msk.f32.vlgmr.msra.gmra.mrb[10].mxu1 %vm1273_vm7, %v1268_v35 }
 0x505   : > { %v1343_v36 = vpop.f32.mrb[10].mxu1 }
 0x506   : > { %1347 = vst.msk [vmem:[%s335_s21] sm:$0xff] %vm1273_vm7, %v1343_v36  ;;  %v1587_v37 = vpop.f32.mrb[11].mxu1 }
 0x507   : > { %1682 = shalt.err (!%p1679_p3)
}
 0x508   : > { %s1683_s18 = scalar_lea.hbm %s1960_s25, 128  ;;  %s1687_s17 = scalar_lea.hbm %s2010_s8, 256 }
 0x509   : > { %p1684_p4 = scmp.ne.s32.totalorder %s1960_s25, %s1683_s18  ;;  %p1688_p9 = scmp.lt.u32.totalorder %s1960_s25, %s2010_s8 }
 0x50a   : > { %p1689_p10 = scmp.lt.u32.totalorder %s1687_s17, %s1683_s18  ;;  %p1691_p12 = scmp.lt.u32.totalorder %s1683_s18, %s1960_s25 }
 0x50b   : > { %p1685_p7 = pnand %p1684_p4, %p1827_p5 }
 0x50c   : > { %p1690_p11 = por %p1689_p10, %p1688_p9 }
 0x50d   : > { %p1686_p8 = pneg %p1685_p7 }
 0x50e   : > { %p1692_p13 = por %p1691_p12, %p1690_p11 }
 0x510   : > { %p1693_p0 = pnand %p1692_p13, %p1686_p8 }
 0x512   : > { %1696 = shalt.err (!%p1693_p0)
}
 0x513   : > { %1603 = dma.vmem_to_hbm [thread:$0]  (%p1827_p5), %s1962_s22, 128, %s1960_s25, %s1349_s26  }
 0x514 PF: > { %p1609_p1 = scmp.ge.s32.totalorder %s1731_s30, 2  ;;  %s1374_s24 = sand.u32 1, %s1719_s27  }
 0x515   : > { %s1375_s10 = scalar_lea.sflag [#allocation4], %s1374_s24 }
 0x516   : > { %p1606_p2 = pnand %p1609_p1, %p1831_p6 }
 0x518   : > { %1714 = dma.done.wait (!%p1606_p2), %s1375_s10, 128  }
 0x519   : > { %1716 = vsyncadd (!%p1606_p2), %s1375_s10, 4294967168  ;;  %p18_p3 = scmp.ge.s32.totalorder %s1814_s11, 4   ;;  %s2013_s27 = smov %s1723_s28 }
 0x51a   : > { %s2014_s28 = smov %s1727_s29  ;;  %s2015_s29 = smov %s1825_s14 }
 0x51b   : > { %s2016_s30 = smov %s1814_s11  ;;  %20 = sbr.rel (!%p18_p3) target bundleno = 3 (0x3), region = 96 }
 0x522   :  { %1380 = vsyncpa [#allocation4], 1 }
 0x523   :  { %1382 = vsyncpa [#allocation4 + $0x1], 1 }

</bundles_post_ra>
